<compile_context>
chip_gen: v7x
topology: tpu7x:2x2x1
jax: 0.10.0
libtpu: 0.0.40
codegen_flags: <defaults>
</compile_context>

<pallas_src>
import functools

import numpy as np
import jax
import jax.numpy as jnp
from jax.experimental import pallas as pl
from jax.experimental.pallas import tpu as pltpu  # noqa: F401  (TPU backend)

EPS = 1e-5
C1, C2 = 8, 14          # conv output channels fixed by the module
K1, K2 = 4, 3           # conv kernel heights


def _model_cnn_kernel(B, P2, PB, H2,
                      xcol_ref, w1_ref, qv_ref, w2_ref, rv_ref, w3_ref,
                      w4_ref, vec_ref, out_ref):
    f32 = jnp.float32

    # ---- small per-channel shifts / biases, packed into one (8, 64) slab ----
    t1 = vec_ref[0:1, 0:C1]     # BN1 shift (+conv1 bias)      (1, 8)
    t2 = vec_ref[1:2, 0:C2]     # BN2 shift (+conv2 bias)      (1, 14)
    b3 = vec_ref[2:3, :]        # lin1 bias                    (1, 64)
    b4 = vec_ref[3:4, :]        # lin2 bias                    (1, 64)
    w5 = vec_ref[4:5, :]        # lin3 weight row              (1, 64)
    b5 = vec_ref[5:6, 0:1]      # lin3 bias                    (1, 1)

    # ---- Conv2d(1, 8, (4, F)) + BN1 + ReLU: one im2col matmul over the batch ----
    h = jnp.dot(xcol_ref[...], w1_ref[...], preferred_element_type=f32)   # (P1, C1)
    h = jnp.maximum(h + t1, 0.0)

    # ---- AvgPool1 + conv2 time-taps folded into one block-diag matmul ----
    hq = jnp.dot(qv_ref[...], h, preferred_element_type=f32)              # (K2*P2, C1)

    # ---- Conv2d(8, 14, (3, 1)) channel mixing: K2 tile-aligned row blocks ----
    g = jnp.dot(hq[0:P2], w2_ref[0], preferred_element_type=f32)          # (P2, C2)
    for k in range(1, K2):
        g = g + jnp.dot(hq[k * P2:(k + 1) * P2], w2_ref[k],
                        preferred_element_type=f32)
    g = jnp.maximum(g + t2, 0.0)                                          # BN2 + ReLU

    # ---- AvgPool2 + channel-major flatten row-selection in one matmul ----
    gr = jnp.dot(rv_ref[...], g, preferred_element_type=f32)              # (H2*PB, C2)

    # ---- Linear(28, 64): flatten order folded into w3, H2 full row-block matmuls ----
    z = b3                                                                # (1, 64)
    for h2 in range(H2):
        z = z + jnp.dot(gr[h2 * PB:(h2 + 1) * PB], w3_ref[h2],
                        preferred_element_type=f32)                       # (PB, 64)
    z = jnp.maximum(z, 0.0)

    # ---- Linear(64, 64) + ReLU ----
    z = jnp.maximum(jnp.dot(z, w4_ref[...], preferred_element_type=f32) + b4, 0.0)

    # ---- Linear(64, 1): VPU multiply + lane reduction (skip an N=1 matmul) ----
    y = jnp.sum(z * w5, axis=-1, keepdims=True) + b5                      # (PB, 1)

    out_ref[...] = y[0:B]   # single dense store for the whole batch


def model_cnn_forward(inputs, handcrafted_feature, params):
    # handcrafted_feature is unused by Model_CNN.forward (kept for signature parity)
    del handcrafted_feature
    B, W, F = inputs.shape
    T1 = W - (K1 - 1)              # time extent after conv1 (kernel height 4)
    H1 = (T1 - 2) // 2 + 1         # after AvgPool2d((2, 1), stride=2)
    T2 = H1 - (K2 - 1)             # after conv2 (kernel height 3)
    H2 = (T2 - 2) // 2 + 1         # after AvgPool2d((2, 1), stride=2)
    assert C2 * H2 == 14 * (W - 10) // 4, \
        "window_size incompatible with Linear in_features"

    P1 = ((B * T1 + 7) // 8) * 8   # sublane-aligned row count for the im2col slab
    P2 = ((B * T2 + 7) // 8) * 8   # sublane-aligned row-block size for conv2 taps
    PB = ((B + 7) // 8) * 8        # sublane-aligned row-block size for flatten sel

    x = inputs.astype(jnp.float32)

    # --- im2col for conv1 (wrapper-side: keeps all sublane shuffles out of kernel) ---
    x_col = jnp.concatenate([x[:, k:k + T1, :] for k in range(K1)], axis=-1)
    x_col = x_col.reshape(B * T1, K1 * F)                                  # (B*T1, 4F)
    x_col = jnp.pad(x_col, ((0, P1 - B * T1), (0, 0)))                     # (P1, 4F)

    # --- parameter folding (inference-mode BN folded into conv weight / shift) ---
    s1 = params["bn1_gamma"] / jnp.sqrt(params["bn1_var"] + EPS)           # (C1,)
    t1 = params["bn1_beta"] + s1 * (params["conv1_b"] - params["bn1_mean"])
    w1c = jnp.transpose(params["conv1_w"][:, 0], (1, 2, 0)).reshape(K1 * F, C1)
    w1c = w1c * s1                                                         # fold BN scale

    s2 = params["bn2_gamma"] / jnp.sqrt(params["bn2_var"] + EPS)           # (C2,)
    t2 = params["bn2_beta"] + s2 * (params["conv2_b"] - params["bn2_mean"])
    w2s = jnp.transpose(params["conv2_w"][:, :, :, 0], (2, 1, 0)) * s2     # (K2, C1, C2)

    # torch Linear: y = x @ W.T + b ; flattened index = c*H2 + h (channel-major)
    w3 = jnp.transpose(params["lin1_w"].reshape(64, C2, H2), (2, 1, 0))    # (H2, C2, 64)
    w4 = params["lin2_w"].T                                                # (64, 64)

    # --- pool1 ∘ conv2-time-shift row-mixing matrix (block-diagonal over batch) ---
    qv = np.zeros((K2 * P2, P1), np.float32)
    for k in range(K2):
        for b in range(B):
            for t in range(T2):
                r = k * P2 + b * T2 + t
                c = b * T1 + 2 * (t + k)
                qv[r, c] = 0.5
                qv[r, c + 1] = 0.5

    # --- pool2 ∘ flatten row-selection matrix (padded rows/cols are zero) ---
    rv = np.zeros((H2 * PB, P2), np.float32)
    for h2 in range(H2):
        for b in range(B):
            r = h2 * PB + b
            c = b * T2 + 2 * h2
            rv[r, c] = 0.5
            rv[r, c + 1] = 0.5

    # --- pack the six tiny vectors into one (8, 64) slab (fewer prologue DMAs) ---
    vec = jnp.zeros((8, 64), jnp.float32)
    vec = vec.at[0, :C1].set(t1)
    vec = vec.at[1, :C2].set(t2)
    vec = vec.at[2, :].set(params["lin1_b"])
    vec = vec.at[3, :].set(params["lin2_b"])
    vec = vec.at[4, :].set(params["lin3_w"][0])
    vec = vec.at[5, 0].set(params["lin3_b"][0])

    args = (x_col, w1c, jnp.asarray(qv), w2s, jnp.asarray(rv), w3, w4, vec)

    kernel = functools.partial(_model_cnn_kernel, B, P2, PB, H2)
    # Gridless call: whole arrays mapped straight into VMEM, no pipeline
    # prologue/epilogue, no per-array index_map.
    return pl.pallas_call(
        kernel,
        out_shape=jax.ShapeDtypeStruct((B, 1), jnp.float32),
    )(*args)


if __name__ == "__main__":
    B = 2
    window_size = 18          # must satisfy the module's own shape algebra
    ori_feature_num = 8
    handcrafted_feature_num = 5   # unused by forward()
    lin_in = 14 * (window_size - 10) // 4

    key = jax.random.PRNGKey(0)
    ks = jax.random.split(key, 20)
    params = {
        "conv1_w": 0.1 * jax.random.normal(ks[0], (C1, 1, 4, ori_feature_num), jnp.float32),
        "conv1_b": 0.1 * jax.random.normal(ks[1], (C1,), jnp.float32),
        "bn1_gamma": 1.0 + 0.1 * jax.random.normal(ks[2], (C1,), jnp.float32),
        "bn1_beta": 0.1 * jax.random.normal(ks[3], (C1,), jnp.float32),
        "bn1_mean": 0.1 * jax.random.normal(ks[4], (C1,), jnp.float32),
        "bn1_var": jax.random.uniform(ks[5], (C1,), jnp.float32, 0.5, 1.5),
        "conv2_w": 0.1 * jax.random.normal(ks[6], (C2, C1, 3, 1), jnp.float32),
        "conv2_b": 0.1 * jax.random.normal(ks[7], (C2,), jnp.float32),
        "bn2_gamma": 1.0 + 0.1 * jax.random.normal(ks[8], (C2,), jnp.float32),
        "bn2_beta": 0.1 * jax.random.normal(ks[9], (C2,), jnp.float32),
        "bn2_mean": 0.1 * jax.random.normal(ks[10], (C2,), jnp.float32),
        "bn2_var": jax.random.uniform(ks[11], (C2,), jnp.float32, 0.5, 1.5),
        "lin1_w": 0.1 * jax.random.normal(ks[12], (64, lin_in), jnp.float32),
        "lin1_b": 0.1 * jax.random.normal(ks[13], (64,), jnp.float32),
        "lin2_w": 0.1 * jax.random.normal(ks[14], (64, 64), jnp.float32),
        "lin2_b": 0.1 * jax.random.normal(ks[15], (64,), jnp.float32),
        "lin3_w": 0.1 * jax.random.normal(ks[16], (1, 64), jnp.float32),
        "lin3_b": 0.1 * jax.random.normal(ks[17], (1,), jnp.float32),
    }

    inputs = jax.random.normal(ks[18], (B, window_size, ori_feature_num), jnp.float32)
    handcrafted = jax.random.normal(ks[19], (B, handcrafted_feature_num), jnp.float32)

    out = model_cnn_forward(inputs, handcrafted, params)
    out = jax.block_until_ready(out)
    assert out.shape == (B, 1) and bool(jnp.all(jnp.isfinite(out)))
    print("KERNEL_OK")
</pallas_src>

<mosaic_0001>
module attributes {stable_mosaic.version = 11 : i64} {
  func.func @_model_cnn_kernel(%arg0: memref<32x32xf32, #tpu.memory_space<vmem>>, %arg1: memref<32x8xf32, #tpu.memory_space<vmem>>, %arg2: memref<48x32xf32, #tpu.memory_space<vmem>>, %arg3: memref<3x8x14xf32, #tpu.memory_space<vmem>>, %arg4: memref<16x16xf32, #tpu.memory_space<vmem>>, %arg5: memref<2x14x64xf32, #tpu.memory_space<vmem>>, %arg6: memref<64x64xf32, #tpu.memory_space<vmem>>, %arg7: memref<8x64xf32, #tpu.memory_space<vmem>>, %arg8: memref<2x1xf32, #tpu.memory_space<vmem>>) attributes {dimension_semantics = [], scalar_prefetch = 0 : i64, scratch_operands = 0 : i64, tpu.core_type = #tpu.core_type<tc>} {
    %c0 = arith.constant 0 : index
    %c0_0 = arith.constant 0 : index
    %0 = vector.load %arg7[%c0, %c0_0] : memref<8x64xf32, #tpu.memory_space<vmem>>, vector<1x8xf32>
    %c1 = arith.constant 1 : index
    %c0_1 = arith.constant 0 : index
    %1 = vector.load %arg7[%c1, %c0_1] : memref<8x64xf32, #tpu.memory_space<vmem>>, vector<1x14xf32>
    %c2 = arith.constant 2 : index
    %c0_2 = arith.constant 0 : index
    %2 = vector.load %arg7[%c2, %c0_2] : memref<8x64xf32, #tpu.memory_space<vmem>>, vector<1x64xf32>
    %c3 = arith.constant 3 : index
    %c0_3 = arith.constant 0 : index
    %3 = vector.load %arg7[%c3, %c0_3] : memref<8x64xf32, #tpu.memory_space<vmem>>, vector<1x64xf32>
    %c4 = arith.constant 4 : index
    %c0_4 = arith.constant 0 : index
    %4 = vector.load %arg7[%c4, %c0_4] : memref<8x64xf32, #tpu.memory_space<vmem>>, vector<1x64xf32>
    %c5 = arith.constant 5 : index
    %c0_5 = arith.constant 0 : index
    %5 = vector.load %arg7[%c5, %c0_5] : memref<8x64xf32, #tpu.memory_space<vmem>>, vector<1x1xf32>
    %c0_6 = arith.constant 0 : index
    %c0_7 = arith.constant 0 : index
    %6 = vector.load %arg0[%c0_6, %c0_7] : memref<32x32xf32, #tpu.memory_space<vmem>>, vector<32x32xf32>
    %c0_8 = arith.constant 0 : index
    %c0_9 = arith.constant 0 : index
    %7 = vector.load %arg1[%c0_8, %c0_9] : memref<32x8xf32, #tpu.memory_space<vmem>>, vector<32x8xf32>
    %cst = arith.constant dense<0.000000e+00> : vector<32x8xf32>
    %8 = tpu.matmul %6, %7, %cst {dimension_numbers = #tpu.dot_dimension_numbers<[1], [0], [0], [1], [0, 0, 1, 1], [], []>} : vector<32x32xf32>, vector<32x8xf32>, vector<32x8xf32> -> vector<32x8xf32>
    %9 = vector.broadcast %0 : vector<1x8xf32> to vector<32x8xf32>
    %10 = arith.addf %8, %9 : vector<32x8xf32>
    %cst_10 = arith.constant 0.000000e+00 : f32
    %11 = vector.broadcast %cst_10 : f32 to vector<32x8xf32>
    %12 = arith.maximumf %10, %11 : vector<32x8xf32>
    %c0_11 = arith.constant 0 : index
    %c0_12 = arith.constant 0 : index
    %13 = vector.load %arg2[%c0_11, %c0_12] : memref<48x32xf32, #tpu.memory_space<vmem>>, vector<48x32xf32>
    %cst_13 = arith.constant dense<0.000000e+00> : vector<48x8xf32>
    %14 = tpu.matmul %13, %12, %cst_13 {dimension_numbers = #tpu.dot_dimension_numbers<[1], [0], [0], [1], [0, 0, 1, 1], [], []>} : vector<48x32xf32>, vector<32x8xf32>, vector<48x8xf32> -> vector<48x8xf32>
    %15 = vector.extract_strided_slice %14 {offsets = [0, 0], sizes = [16, 8], strides = [1, 1]} : vector<48x8xf32> to vector<16x8xf32>
    %c0_14 = arith.constant 0 : index
    %c0_15 = arith.constant 0 : index
    %c0_16 = arith.constant 0 : index
    %16 = vector.load %arg3[%c0_14, %c0_15, %c0_16] : memref<3x8x14xf32, #tpu.memory_space<vmem>>, vector<1x8x14xf32>
    %17 = vector.shape_cast %16 : vector<1x8x14xf32> to vector<8x14xf32>
    %cst_17 = arith.constant dense<0.000000e+00> : vector<16x14xf32>
    %18 = tpu.matmul %15, %17, %cst_17 {dimension_numbers = #tpu.dot_dimension_numbers<[1], [0], [0], [1], [0, 0, 1, 1], [], []>} : vector<16x8xf32>, vector<8x14xf32>, vector<16x14xf32> -> vector<16x14xf32>
    %19 = vector.extract_strided_slice %14 {offsets = [16, 0], sizes = [16, 8], strides = [1, 1]} : vector<48x8xf32> to vector<16x8xf32>
    %c1_18 = arith.constant 1 : index
    %c0_19 = arith.constant 0 : index
    %c0_20 = arith.constant 0 : index
    %20 = vector.load %arg3[%c1_18, %c0_19, %c0_20] : memref<3x8x14xf32, #tpu.memory_space<vmem>>, vector<1x8x14xf32>
    %21 = vector.shape_cast %20 : vector<1x8x14xf32> to vector<8x14xf32>
    %cst_21 = arith.constant dense<0.000000e+00> : vector<16x14xf32>
    %22 = tpu.matmul %19, %21, %cst_21 {dimension_numbers = #tpu.dot_dimension_numbers<[1], [0], [0], [1], [0, 0, 1, 1], [], []>} : vector<16x8xf32>, vector<8x14xf32>, vector<16x14xf32> -> vector<16x14xf32>
    %23 = arith.addf %18, %22 : vector<16x14xf32>
    %24 = vector.extract_strided_slice %14 {offsets = [32, 0], sizes = [16, 8], strides = [1, 1]} : vector<48x8xf32> to vector<16x8xf32>
    %c2_22 = arith.constant 2 : index
    %c0_23 = arith.constant 0 : index
    %c0_24 = arith.constant 0 : index
    %25 = vector.load %arg3[%c2_22, %c0_23, %c0_24] : memref<3x8x14xf32, #tpu.memory_space<vmem>>, vector<1x8x14xf32>
    %26 = vector.shape_cast %25 : vector<1x8x14xf32> to vector<8x14xf32>
    %cst_25 = arith.constant dense<0.000000e+00> : vector<16x14xf32>
    %27 = tpu.matmul %24, %26, %cst_25 {dimension_numbers = #tpu.dot_dimension_numbers<[1], [0], [0], [1], [0, 0, 1, 1], [], []>} : vector<16x8xf32>, vector<8x14xf32>, vector<16x14xf32> -> vector<16x14xf32>
    %28 = arith.addf %23, %27 : vector<16x14xf32>
    %29 = vector.broadcast %1 : vector<1x14xf32> to vector<16x14xf32>
    %30 = arith.addf %28, %29 : vector<16x14xf32>
    %cst_26 = arith.constant 0.000000e+00 : f32
    %31 = vector.broadcast %cst_26 : f32 to vector<16x14xf32>
    %32 = arith.maximumf %30, %31 : vector<16x14xf32>
    %c0_27 = arith.constant 0 : index
    %c0_28 = arith.constant 0 : index
    %33 = vector.load %arg4[%c0_27, %c0_28] : memref<16x16xf32, #tpu.memory_space<vmem>>, vector<16x16xf32>
    %cst_29 = arith.constant dense<0.000000e+00> : vector<16x14xf32>
    %34 = tpu.matmul %33, %32, %cst_29 {dimension_numbers = #tpu.dot_dimension_numbers<[1], [0], [0], [1], [0, 0, 1, 1], [], []>} : vector<16x16xf32>, vector<16x14xf32>, vector<16x14xf32> -> vector<16x14xf32>
    %35 = vector.extract_strided_slice %34 {offsets = [0, 0], sizes = [8, 14], strides = [1, 1]} : vector<16x14xf32> to vector<8x14xf32>
    %c0_30 = arith.constant 0 : index
    %c0_31 = arith.constant 0 : index
    %c0_32 = arith.constant 0 : index
    %36 = vector.load %arg5[%c0_30, %c0_31, %c0_32] : memref<2x14x64xf32, #tpu.memory_space<vmem>>, vector<1x14x64xf32>
    %37 = vector.shape_cast %36 : vector<1x14x64xf32> to vector<14x64xf32>
    %cst_33 = arith.constant dense<0.000000e+00> : vector<8x64xf32>
    %38 = tpu.matmul %35, %37, %cst_33 {dimension_numbers = #tpu.dot_dimension_numbers<[1], [0], [0], [1], [0, 0, 1, 1], [], []>} : vector<8x14xf32>, vector<14x64xf32>, vector<8x64xf32> -> vector<8x64xf32>
    %39 = vector.broadcast %2 : vector<1x64xf32> to vector<8x64xf32>
    %40 = arith.addf %39, %38 : vector<8x64xf32>
    %41 = vector.extract_strided_slice %34 {offsets = [8, 0], sizes = [8, 14], strides = [1, 1]} : vector<16x14xf32> to vector<8x14xf32>
    %c1_34 = arith.constant 1 : index
    %c0_35 = arith.constant 0 : index
    %c0_36 = arith.constant 0 : index
    %42 = vector.load %arg5[%c1_34, %c0_35, %c0_36] : memref<2x14x64xf32, #tpu.memory_space<vmem>>, vector<1x14x64xf32>
    %43 = vector.shape_cast %42 : vector<1x14x64xf32> to vector<14x64xf32>
    %cst_37 = arith.constant dense<0.000000e+00> : vector<8x64xf32>
    %44 = tpu.matmul %41, %43, %cst_37 {dimension_numbers = #tpu.dot_dimension_numbers<[1], [0], [0], [1], [0, 0, 1, 1], [], []>} : vector<8x14xf32>, vector<14x64xf32>, vector<8x64xf32> -> vector<8x64xf32>
    %45 = arith.addf %40, %44 : vector<8x64xf32>
    %cst_38 = arith.constant 0.000000e+00 : f32
    %46 = vector.broadcast %cst_38 : f32 to vector<8x64xf32>
    %47 = arith.maximumf %45, %46 : vector<8x64xf32>
    %c0_39 = arith.constant 0 : index
    %c0_40 = arith.constant 0 : index
    %48 = vector.load %arg6[%c0_39, %c0_40] : memref<64x64xf32, #tpu.memory_space<vmem>>, vector<64x64xf32>
    %cst_41 = arith.constant dense<0.000000e+00> : vector<8x64xf32>
    %49 = tpu.matmul %47, %48, %cst_41 {dimension_numbers = #tpu.dot_dimension_numbers<[1], [0], [0], [1], [0, 0, 1, 1], [], []>} : vector<8x64xf32>, vector<64x64xf32>, vector<8x64xf32> -> vector<8x64xf32>
    %50 = vector.broadcast %3 : vector<1x64xf32> to vector<8x64xf32>
    %51 = arith.addf %49, %50 : vector<8x64xf32>
    %cst_42 = arith.constant 0.000000e+00 : f32
    %52 = vector.broadcast %cst_42 : f32 to vector<8x64xf32>
    %53 = arith.maximumf %51, %52 : vector<8x64xf32>
    %54 = vector.broadcast %4 : vector<1x64xf32> to vector<8x64xf32>
    %55 = arith.mulf %53, %54 : vector<8x64xf32>
    %cst_43 = arith.constant dense<0.000000e+00> : vector<8xf32>
    %56 = vector.multi_reduction <add>, %55, %cst_43 [1] : vector<8x64xf32> to vector<8xf32>
    %57 = vector.shape_cast %56 : vector<8xf32> to vector<8x1xf32>
    %58 = vector.broadcast %5 : vector<1x1xf32> to vector<8x1xf32>
    %59 = arith.addf %57, %58 : vector<8x1xf32>
    %60 = vector.extract_strided_slice %59 {offsets = [0, 0], sizes = [2, 1], strides = [1, 1]} : vector<8x1xf32> to vector<2x1xf32>
    %c0_44 = arith.constant 0 : index
    %c0_45 = arith.constant 0 : index
    %61 = vector.load %arg8[%c0_44, %c0_45] : memref<2x1xf32, #tpu.memory_space<vmem>>, vector<2x1xf32>
    tpu.vector_store %arg8[%c0_44, %c0_45], %60 {strides = array<i32>} : memref<2x1xf32, #tpu.memory_space<vmem>>, vector<2x1xf32>,
    return
  }
}

</mosaic_0001>

<bundles_post_ra>
// kernel: tpu_custom_call.1
= control target key start
LH: loop header
LB: loop body
LE: loop exit
PB: predicated region body
PF: predicated region fallthrough
CT: control target
= control target key end

     0   :  { %13 = vsyncpa [#allocation3], 0  ;;  %s1141_s27 = smov [#allocation2]   ;;  %s1336_s0 = inlined_call_operand.vmem [shape: f32[32,32], index: 0, kind: input, shape index: {}]   ;;  %s1337_s1 = inlined_call_operand.vmem [shape: f32[32,8], index: 1, kind: input, shape index: {}]   ;;  %s1338_s2 = inlined_call_operand.vmem [shape: f32[48,32], index: 2, kind: input, shape index: {}]   ;;  %s1339_s3 = inlined_call_operand.vmem [shape: f32[3,8,14], index: 3, kind: input, shape index: {}]   ;;  %s1340_s4 = inlined_call_operand.hbm [shape: f32[16,16], index: 4, kind: input, shape index: {}]   ;;  %s1341_s5 = inlined_call_operand.vmem [shape: f32[2,14,64], index: 5, kind: input, shape index: {}]   ;;  %s1342_s6 = inlined_call_operand.vmem [shape: f32[64,64], index: 6, kind: input, shape index: {}]   ;;  %s1343_s7 = inlined_call_operand.vmem [shape: f32[8,64], index: 7, kind: input, shape index: {}]   ;;  %s1344_s8 = inlined_call_operand.vmem [shape: f32[2,1], index: 8, kind: output, shape index: {}]  }
   0x1   :  { %s27_s28 = sshll.u32 %s1141_s27, 4  ;;  %s1117_s9 = scalar_lea.hbm %s1340_s4, 256  ;;  %s28_s28 = int_to_ptr.vmem [resolvable:$true] %s27_s28 }
   0x2   :  { %p1118_p0 = scmp.ne.s32.totalorder %s1340_s4, %s1117_s9  ;;  %p1121_p1 = scmp.lt.u32.totalorder %s1117_s9, %s1340_s4 }
   0x4   :  { %p1123_p2 = pnand %p1121_p1, %p1118_p0 }
   0x6   :  { %1126 = shalt.err (!%p1123_p2)
}
   0x7   :  { %s1127_s14 = scalar_lea.vmem %s28_s28, 256  ;;  %p1132_p4 = scmp.lt.s32.totalorder %s28_s28, %s28_s28 }
   0x8   :  { %p1128_p3 = scmp.ne.s32.totalorder %s28_s28, %s1127_s14  ;;  %p1133_p5 = scmp.lt.s32.totalorder %s1127_s14, %s1127_s14 }
   0xa   :  { %p1134_p6 = por %p1133_p5, %p1132_p4 }
   0xc   :  { %p1135_p7 = pnand %p1134_p6, %p1128_p3 }
   0xe   :  { %1138 = shalt.err (!%p1135_p7)
}
   0xf   :  { %s1142_s15 = smov 128   ;;  %s1143_s16 = smov 8  }
  0x10   :  { %33 = dma.hbm_to_vmem [thread:$0]  %s1340_s4, 256, %s28_s28, [#allocation3], %s1142_s15, %s1142_s15, %s1143_s16  }
  0x11   :  { %1139 = dma.done.wait [#allocation3], 256  }
  0x12   :  { %1140 = vsyncadd [#allocation3], 4294967040  ;;  %vm61_vm0 = vcmask 261120   ;;  %v53_v0 = vld [vmem:[%s1337_s1] sm:$0xff]  ;;  %v54_v1 = vld [vmem:[%s1337_s1 + $0x8] sm:$0xff]  ;;  %vm285_vm1 = vcmask 64512  }
  0x13   :  { %v55_v2 = vld [vmem:[%s1337_s1 + $0x10] sm:$0xff]  ;;  %v1063_v3 = vpack.c.bf16 %v54_v1, %v53_v0  ;;  %v56_v4 = vld [vmem:[%s1337_s1 + $0x18] sm:$0xff]  ;;  %v49_v5 = vld [vmem:[%s1336_s0] sm:$0xff]  ;;  %vm543_vm2 = vcmask 130048   ;;  %vm631_vm3 = vcmask 1045504   ;;  %v1144_v43 = vmov 0.0|0.0  }
  0x14   :  { %v1067_v6 = vpack.c.bf16 %v56_v4, %v55_v2  ;;  %985 = vmatprep.mubr.msk.f32.mxu1 %vm61_vm0, %v49_v5  ;;  %v50_v7 = vld [vmem:[%s1336_s0 + $0x8] sm:$0xff]  ;;  %v51_v8 = vld [vmem:[%s1336_s0 + $0x10] sm:$0xff]  ;;  %v52_v9 = vld [vmem:[%s1336_s0 + $0x18] sm:$0xff]  ;;  %vm1145_vm4 = vmmov 1   ;;  %vm1146_vm6 = vmmov 0   ;;  %v1147_v55 = vmov 0.0  }
  0x15   :  { %1064 = vmatprep.subr.bf16.mxu1 %v1063_v3  ;;  %v163_v10 = vld [vmem:[%s1338_s2] sm:$0xff]  ;;  %v164_v26 = vld [vmem:[%s1338_s2 + $0x8] sm:$0xff]  ;;  %v165_v27 = vld [vmem:[%s1338_s2 + $0x10] sm:$0xff]  ;;  %vm627_vm7 = vcmask 113664   ;;  %vm803_vm8 = vcmask 523264   ;;  %vm891_vm9 = vcmask 1024  }
  0x16   :  { %1066 = vmatpush3.bf16.msra.mxu1 %v1063_v3  ;;  %v898_v11 = vld [vmem:[%s1343_s7] ss:$0 sm:$0xff]  ;;  %v166_v28 = vld [vmem:[%s1338_s2 + $0x18] sm:$0xff]  ;;  %v168_v30 = vld [vmem:[%s1338_s2 + $0x28] sm:$0xff] }
  0x17   :  { %1068 = vmatprep.subr.bf16.mxu1 %v1067_v6  ;;  %v167_v29 = vld [vmem:[%s1338_s2 + $0x20] sm:$0xff]  ;;  %v909_v31 = vld [vmem:[%s1339_s3 + $0x8] sm:$0xff]  ;;  %v914_v37 = vld [vmem:[%s1339_s3 + $0x10] sm:$0xff] }
  0x18   :  { %1008 = vmatprep.subr.mxu0 %v909_v31  ;;  %v282_v32 = vld [vmem:[%s1339_s3] sm:$0xff]  ;;  %v626_v42 = vld [vmem:[%s1341_s5 + $0x8] sm:$0x3f]  ;;  %vm1276_vm5 = vmpackc.low %vm631_vm3, %vm1145_vm4 }
  0x19   :  { %1009 = vmatpush3.msra.mxu0 %v909_v31  ;;  %v541_v40 = vld [vmem:[#allocation2] sm:$0xff]  ;;  %v542_v54 = vld [vmem:[#allocation2 + $0x8] sm:$0xff]  ;;  %v793_v58 = vld [vmem:[%s1342_s6 + $0x10] sm:$0xff] }
  0x1a   :  { %1070 = vmatpush3.bf16.msra.mxu1 %v1067_v6  ;;  %1013 = vmatprep.subr.mxu0 %v282_v32  ;;  %v625_v41 = vld [vmem:[%s1341_s5] sm:$0xff]  ;;  %v792_v57 = vld [vmem:[%s1342_s6 + $0x8] sm:$0xff]  ;;  %v794_v60 = vld [vmem:[%s1342_s6 + $0x18] sm:$0xff] }
  0x1b   :  { %v1084_v44 = vpack.c.bf16 %v626_v42, %v625_v41  ;;  %v917_v46 = vld [vmem:[%s1343_s7 + $0x1] ss:$0 sm:$0xff]  ;;  %v1095_v61 = vpack.c.bf16 %v794_v60, %v793_v58  ;;  %v796_v63 = vld [vmem:[%s1342_s6 + $0x28] sm:$0xff]  ;;  %v923_v1 = vld [vmem:[%s1341_s5 + $0x10] sm:$0xff] }
  0x1c   :  { %v791_v56 = vld [vmem:[%s1342_s6] sm:$0xff]  ;;  %v924_v2 = vld [vmem:[%s1341_s5 + $0x18] sm:$0x3f]  ;;  %v797_v6 = vld [vmem:[%s1342_s6 + $0x30] sm:$0xff] }
  0x1d   :  { %986 = vmatmul.mubr.msk.f32.vlgmr.msra.gmra.mrb[0].mxu1 %vm61_vm0, %v50_v7  ;;  %v1092_v59 = vpack.c.bf16 %v792_v57, %v791_v56  ;;  %v795_v62 = vld [vmem:[%s1342_s6 + $0x20] sm:$0xff]  ;;  %v1088_v3 = vpack.c.bf16 %v924_v2, %v923_v1  ;;  %v798_v7 = vld [vmem:[%s1342_s6 + $0x38] sm:$0xff] }
  0x1e   :  { %988 = vmatprep.mubr.msk.f32.mxu1 %vm61_vm0, %v51_v8  ;;  %v1098_v0 = vpack.c.bf16 %v796_v63, %v795_v62  ;;  %v1101_v8 = vpack.c.bf16 %v798_v7, %v797_v6 }
  0x21   :  { %989 = vmatmul.mubr.msk.f32.gmra.mrb[2].mxu1 %vm61_vm0, %v52_v9  ;;  %v922_v9 = vld [vmem:[%s1343_s7 + $0x2] ss:$0 sm:$0xff] }
  0x22   :  { %999 = vmatprep.mubr.msk.f32.mxu1 %vm61_vm0, %v163_v10 }
  0xf0   :  { %v987_v12 = vpop.f32.mrb[0].mxu1 }
  0xf1   :  { %v146_v13 = vadd.f32 %v987_v12, %v898_v11  ;;  %v140_v14 = vpop.f32.mrb[1].mxu1 }
  0xf2   :  { %v141_v15 = vadd.f32 %v898_v11, %v140_v14  ;;  %v927_v14 = vld [vmem:[%s1343_s7 + $0x3] ss:$0 sm:$0xff] }
  0xf3   :  { %v160_v16 = vmax.f32 %v146_v13, 0.0 }
  0xf4   :  { %v159_v17 = vmax.f32 %v141_v15, 0.0  ;;  %v990_v18 = vpop.f32.mrb[2].mxu1 }
  0xf5   :  { %v156_v19 = vadd.f32 %v990_v18, %v898_v11  ;;  %v150_v20 = vpop.f32.mrb[3].mxu1  ;;  %v929_v18 = vld [vmem:[%s1343_s7 + $0x4] ss:$0 sm:$0xff] }
  0xf6   :  { %v1071_v21 = vpack.c.bf16 %v160_v16, %v159_v17  ;;  %v151_v22 = vadd.f32 %v898_v11, %v150_v20 }
  0xf7   :  { %v162_v23 = vmax.f32 %v156_v19, 0.0 }
  0xf8   :  { %v161_v24 = vmax.f32 %v151_v22, 0.0  ;;  %1072 = vmatprep.subr.bf16.mxu1 %v1071_v21  ;;  %v930_v22 = vld [vmem:[%s1343_s7 + $0x5] ss:$0 sm:$0xff] }
  0xf9   :  { %1074 = vmatpush3.bf16.msra.mxu1 %v1071_v21 }
  0xfa   :  { %v1075_v25 = vpack.c.bf16 %v162_v23, %v161_v24 }
  0xfc   :  { %1076 = vmatprep.subr.bf16.mxu1 %v1075_v25 }
  0xfd   :  { %1078 = vmatpush3.bf16.msra.mxu1 %v1075_v25 }
  0xfe   :  { %1083 = vmatprep.subr.bf16.mxu1 %v1144_v43 }
 0x100   :  { %1000 = vmatmul.mubr.msk.f32.vlgmr.msra.gmra.mrb[4].mxu1 %vm61_vm0, %v164_v26 }
 0x101   :  { %1002 = vmatprep.mubr.msk.f32.mxu1 %vm61_vm0, %v165_v27  ;;  %1086 = vmatpush3.bf16.msk.msra.mxu1 %vm1276_vm5, %v1084_v44 }
 0x102   :  { %1087 = vmatprep.subr.bf16.mxu1 %v1144_v43 }
 0x104   :  { %1003 = vmatmul.mubr.msk.f32.gmra.mrb[6].mxu1 %vm61_vm0, %v166_v28 }
 0x105   :  { %1005 = vmatprep.mubr.msk.f32.mxu1 %vm61_vm0, %v167_v29 }
 0x108   :  { %1006 = vmatmul.mubr.msk.f32.gmra.mrb[8].mxu1 %vm61_vm0, %v168_v30 }
 0x109   :  { %1034 = vmatprep.mubr.msk.f32.mxu1 %vm1146_vm6, %v1147_v55 }
 0x1d3   :  { %v1001_v33 = vpop.f32.mrb[4].mxu1 }
 0x1d4   :  { %v253_v34 = vpop.f32.mrb[5].mxu1 }
 0x1d7   :  { %v1004_v35 = vpop.f32.mrb[6].mxu1 }
 0x1d8   :  { %v263_v36 = vpop.f32.mrb[7].mxu1 }
 0x1d9   :  { %1010 = vmatprep.mubr.msk.f32.mxu0 %vm285_vm1, %v263_v36 }
 0x1da   :  { %1011 = vmatmul.mubr.msk.f32.vlgmr.msra.gmra.mrb[0].mxu0 %vm285_vm1, %v1004_v35 }
 0x1db   :  { %1014 = vmatpush3.msra.mxu0 %v282_v32  ;;  %1015 = vmatprep.mubr.msk.f32.mxu0 %vm285_vm1, %v253_v34  ;;  %v1007_v38 = vpop.f32.mrb[8].mxu1 }
 0x1dc   :  { %1018 = vmatprep.subr.mxu0 %v914_v37  ;;  %v273_v39 = vpop.f32.mrb[9].mxu1 }
 0x1e2   :  { %1016 = vmatmul.mubr.msk.f32.vlgmr.msra.gmra.mrb[0].mxu0 %vm285_vm1, %v1001_v33 }
 0x1e3   :  { %1019 = vmatpush3.msra.mxu0 %v914_v37  ;;  %1020 = vmatprep.mubr.msk.f32.mxu0 %vm285_vm1, %v273_v39 }
 0x1ea   :  { %1021 = vmatmul.mubr.msk.f32.vlgmr.msra.gmra.mrb[0].mxu0 %vm285_vm1, %v1007_v38 }
 0x1eb   :  { %1027 = vmatprep.mubr.msk.f32.mxu0 %vm543_vm2, %v541_v40 }
 0x2bd   :  { %v1022_v47 = vpop.f32.mrb[0].mxu0 }
 0x2be   :  { %v538_v48 = vadd.f32 %v1022_v47, %v917_v46  ;;  %v522_v49 = vpop.f32.mrb[1].mxu0 }
 0x2bf   :  { %v537_v50 = vadd.f32 %v917_v46, %v522_v49 }
 0x2c0   :  { %v540_v51 = vmax.f32 %v538_v48, 0.0 }
 0x2c1   :  { %v539_v52 = vmax.f32 %v537_v50, 0.0 }
 0x2c3   :  { %v1079_v53 = vpack.c.bf16 %v540_v51, %v539_v52 }
 0x2c5   :  { %1080 = vmatprep.subr.bf16.mxu0 %v1079_v53 }
 0x2c6   :  { %1082 = vmatpush3.bf16.msra.mxu0 %v1079_v53 }
 0x2c7   :  { %1091 = vmatprep.subr.bf16.mxu0 %v1144_v43 }
 0x2c9   :  { %1028 = vmatmul.mubr.msk.f32.vlgmr.msra.gmra.mrb[2].mxu0 %vm543_vm2, %v542_v54 }
 0x2ca   :  { %1060 = vmatprep.mubr.msk.f32.mxu0 %vm1146_vm6, %v1147_v55  ;;  %1093 = vmatpush3.bf16.msra.mxu0 %v1092_v59 }
 0x2cb   :  { %1094 = vmatprep.subr.bf16.mxu0 %v1144_v43 }
 0x2ce   :  { %1096 = vmatpush3.bf16.msra.mxu0 %v1095_v61 }
 0x2cf   :  { %1097 = vmatprep.subr.bf16.mxu0 %v1144_v43 }
 0x2d2   :  { %1099 = vmatpush3.bf16.msra.mxu0 %v1098_v0 }
 0x2d3   :  { %1100 = vmatprep.subr.bf16.mxu0 %v1144_v43 }
 0x2d6   :  { %1102 = vmatpush3.bf16.msra.mxu0 %v1101_v8 }
 0x39c   :  { %v1029_v4 = vpop.f32.mrb[2].mxu0 }
 0x39d   :  { %v616_v5 = vpop.f32.mrb[3].mxu0 }
 0x39e   :  { %1035 = vmatmul.mubr.msk.f32.vlgmr.msra.gmra.mrb[10].mxu1 %vm627_vm7, %v616_v5 }
 0x39f   :  { %1090 = vmatpush3.bf16.msk.msra.mxu1 %vm1276_vm5, %v1088_v3  ;;  %1041 = vmatprep.mubr.msk.f32.mxu1 %vm1146_vm6, %v1147_v55 }
 0x3a6   :  { %1042 = vmatmul.mubr.msk.f32.vlgmr.msra.gmra.mrb[10].mxu1 %vm627_vm7, %v1029_v4 }
 0x479   :  { %v785_v10 = vpop.f32.mrb[10].mxu1 }
 0x47a   :  { %v1103_v11 = vadd.f32 %v922_v9, %v785_v10  ;;  %v1043_v12 = vpop.f32.mrb[11].mxu1 }
 0x47c   :  { %v790_v13 = vmax.f32 %v1103_v11, 0.0 }
 0x47e   :  { %1061 = vmatmul.mubr.msk.f32.vlgmr.msra.gmra.mrb[4].mxu0 %vm803_vm8, %v790_v13 }
 0x551   :  { %v873_v15 = vpop.f32.mrb[4].mxu0 }
 0x552   :  { %v874_v16 = vadd.f32 %v927_v14, %v873_v15  ;;  %v1062_v17 = vpop.f32.mrb[5].mxu0 }
 0x554   :  { %v877_v19 = vmax.f32 %v874_v16, 0.0 }
 0x556   :  { %v882_v20 = vmul.f32 %v929_v18, %v877_v19 }
 0x558   :  { %v883_v21 = vsel %vm803_vm8, %v882_v20, 0.0 }
 0x559   :  { %884 = vadd.xlane.f32.xlu0 %v883_v21 }
 0x5e6   :  { %v885_v23 = vpop.xlane.xlu0 %884 }
 0x5e7   :  { %v890_v24 = vadd.f32 %v930_v22, %v885_v23 }
 0x5e9   :  { %892 = vst.msk [vmem:[%s1344_s8] sm:$0x3] %vm891_vm9, %v890_v24 }
 0x5ea   :  { %897 = vsyncpa [#allocation3], 1 }

</bundles_post_ra>
